<compile_context>
chip_gen: v7x
topology: tpu7x:2x2x1
jax: 0.10.0
libtpu: 0.0.40
codegen_flags: <defaults>
</compile_context>

<pallas_src>
import functools

import jax
import jax.numpy as jnp
from jax.experimental import pallas as pl
from jax.experimental.pallas import tpu as pltpu

EPS = 1e-5


# ----------------------------------------------------------------------------
# Kernel
# ----------------------------------------------------------------------------
def _double_conv_kernel(x_ref,                      # (N*H, W*Cin)   compute dtype
                        w1_ref, g1_ref, be1_ref,    # (W*Cin,  3*W*Cout), (1, W*Cout) f32 x2
                        w2_ref, g2_ref, be2_ref,    # (W*Cout, 3*W*Cout), (1, W*Cout) f32 x2
                        o_ref,                      # (N*H, W*Cout) f32
                        *, H, W, Cout):
    R = x_ref.shape[0]                              # N*H rows
    WCout = W * Cout
    inv_m = 1.0 / float(R * W)                      # 1 / (N*H*W)

    # Image-boundary masks for the dy row shifts (rows wrap across images when
    # rolling the flat N*H axis; mask with row-index % H).
    row = jax.lax.broadcasted_iota(jnp.int32, (R, 1), 0) % H
    top_ok = row != 0          # output rows that have an in-image y-1 neighbour
    bot_ok = row != (H - 1)    # output rows that have an in-image y+1 neighbour

    def conv3x3(a2d, w_ref):
        # One MXU contraction over all dx taps and all three dy bands at once.
        p = jnp.dot(a2d, w_ref[...], preferred_element_type=jnp.float32)  # (R, 3*WCout)
        p_ym1 = p[:, 0 * WCout:1 * WCout]   # dy=0 band: wants input row y-1
        p_y   = p[:, 1 * WCout:2 * WCout]   # dy=1 band: input row y
        p_yp1 = p[:, 2 * WCout:3 * WCout]   # dy=2 band: wants input row y+1
        # dy shifts as sublane rolls (XLU) + boundary masks (VPU); slices above
        # start at lane offsets 0/128/256 so no relayout copies.
        acc = p_y
        acc = acc + jnp.where(top_ok, pltpu.roll(p_ym1, shift=1, axis=0), 0.0)
        acc = acc + jnp.where(bot_ok, pltpu.roll(p_yp1, shift=R - 1, axis=0), 0.0)
        return acc

    def bn_relu(acc, gamma_l, beta_l):
        # Training-mode BatchNorm (biased var, eps=1e-5) + ReLU, single traversal.
        # Sum and sum-of-squares stacked into one (2, W*Cout) operand; the
        # per-channel fold over the W lane groups is a lane-roll tree reduction.
        s = jnp.concatenate(
            [jnp.sum(acc, axis=0, keepdims=True),
             jnp.sum(acc * acc, axis=0, keepdims=True)], axis=0)          # (2, WCout)
        sh = WCout // 2
        while sh >= Cout:                      # static Python loop: log2(W) rolls
            s = s + pltpu.roll(s, shift=sh, axis=1)
            sh //= 2
        # After the tree, lane l holds the channel-(l % Cout) statistic, i.e.
        # stats are already broadcast across the W lane groups.
        mean = s[0:1, :] * inv_m
        var = jnp.maximum(s[1:2, :] * inv_m - mean * mean, 0.0)
        scale = gamma_l * jax.lax.rsqrt(var + EPS)                        # (1, WCout)
        shift = beta_l - mean * scale
        return jnp.maximum(acc * scale + shift, 0.0)

    # conv1 -> bn1 -> relu   (no conv bias: cancelled by training-mode BN)
    y1 = bn_relu(conv3x3(x_ref[...], w1_ref), g1_ref[...], be1_ref[...])
    # conv2 -> bn2 -> relu
    y2 = bn_relu(conv3x3(y1.astype(w2_ref.dtype), w2_ref), g2_ref[...], be2_ref[...])
    o_ref[...] = y2


# ----------------------------------------------------------------------------
# Wrapper
# ----------------------------------------------------------------------------
def _band_weights_cat(w, W):
    """HWIO (3,3,Cin,Cout) -> lane-concatenated banded matrix (W*Cin, 3*W*Cout).

    Band dy satisfies B[dy][xin*Cin+ci, xout*Cout+co] = w[dy, dx, ci, co] with
    xin = xout + dx - 1; taps falling outside [0, W) (x zero-padding) dropped.
    The three dy bands are concatenated along the output (lane) axis so the
    whole conv is a single matmul; dy row shifts happen in-kernel via rolls.
    """
    Cin, Cout = w.shape[2], w.shape[3]
    xin = jnp.arange(W)[:, None]
    xout = jnp.arange(W)[None, :]
    bands = []
    for dy in range(3):
        acc = jnp.zeros((W, Cin, W, Cout), jnp.float32)
        for dx in range(3):
            sel = (xin == xout + (dx - 1)).astype(jnp.float32)            # (W, W)
            acc = acc + sel[:, None, :, None] * w[dy, dx][None, :, None, :]
        bands.append(acc.reshape(W * Cin, W * Cout))
    return jnp.concatenate(bands, axis=1)                                  # (W*Cin, 3*W*Cout)


@functools.partial(jax.jit, static_argnames=("compute_dtype",))
def double_conv_block(x_nchw, params, compute_dtype=jnp.bfloat16):
    """Pallas forward. x_nchw: (N, Cin, H, W) f32. Returns (N, Cout, H, W) f32."""
    w1, b1, g1, be1, w2, b2, g2, be2 = params
    del b1, b2  # per-channel conv biases are exactly cancelled by training-mode BN
    N, Cin, H, W = x_nchw.shape
    Cout = w1.shape[-1]
    assert (W & (W - 1)) == 0, "lane-roll BN fold assumes W is a power of two"
    WCout = W * Cout

    # NCHW -> lane-dense rows layout (N*H, W*Cin); layout plumbing fused in this jit.
    x_rows = (jnp.transpose(x_nchw, (0, 2, 3, 1))
              .reshape(N * H, W * Cin).astype(compute_dtype))

    w1c = _band_weights_cat(w1, W).astype(compute_dtype)    # (W*Cin,  3*W*Cout)
    w2c = _band_weights_cat(w2, W).astype(compute_dtype)    # (W*Cout, 3*W*Cout)

    # gamma/beta lane-replicated across the W lane groups (channel = lane % Cout).
    def lane_rep(v):
        return jnp.tile(v.astype(jnp.float32), W).reshape(1, WCout)

    vmem = pl.BlockSpec(memory_space=pltpu.MemorySpace.VMEM)
    kernel = functools.partial(_double_conv_kernel, H=H, W=W, Cout=Cout)
    out_rows = pl.pallas_call(
        kernel,
        out_shape=jax.ShapeDtypeStruct((N * H, WCout), jnp.float32),
        in_specs=[vmem] * 7,
        out_specs=vmem,
        # Actual footprint is ~170 KiB (bf16 weights + activations + f32 out);
        # 2 MiB leaves headroom for compiler scratch without over-reserving.
        compiler_params=pltpu.CompilerParams(vmem_limit_bytes=2 * 1024 * 1024),
    )(x_rows, w1c, lane_rep(g1), lane_rep(be1), w2c, lane_rep(g2), lane_rep(be2))

    return jnp.transpose(out_rows.reshape(N, H, W, Cout), (0, 3, 1, 2))


# ----------------------------------------------------------------------------
# Test harness
# ----------------------------------------------------------------------------
def init_params(key, in_c, out_c):
    """Deterministic synthetic parameters (shapes match the PyTorch module)."""
    ks = jax.random.split(key, 8)
    w1 = 0.1 * jax.random.normal(ks[0], (3, 3, in_c, out_c), jnp.float32)   # HWIO
    b1 = 0.05 * jax.random.normal(ks[1], (out_c,), jnp.float32)
    g1 = 1.0 + 0.1 * jax.random.normal(ks[2], (out_c,), jnp.float32)
    be1 = 0.05 * jax.random.normal(ks[3], (out_c,), jnp.float32)
    w2 = 0.1 * jax.random.normal(ks[4], (3, 3, out_c, out_c), jnp.float32)
    b2 = 0.05 * jax.random.normal(ks[5], (out_c,), jnp.float32)
    g2 = 1.0 + 0.1 * jax.random.normal(ks[6], (out_c,), jnp.float32)
    be2 = 0.05 * jax.random.normal(ks[7], (out_c,), jnp.float32)
    return (w1, b1, g1, be1, w2, b2, g2, be2)


def ref_forward(x_nchw, params):
    """Plain-JAX reference matching the PyTorch module (training-mode BN, with biases)."""
    w1, b1, g1, be1, w2, b2, g2, be2 = params

    def conv(x, w, b):
        y = jax.lax.conv_general_dilated(
            x, w, window_strides=(1, 1), padding="SAME",
            dimension_numbers=("NCHW", "HWIO", "NCHW"))
        return y + b[None, :, None, None]

    def bn(x, g, be):
        mean = jnp.mean(x, axis=(0, 2, 3), keepdims=True)
        var = jnp.mean((x - mean) ** 2, axis=(0, 2, 3), keepdims=True)
        return ((x - mean) * jax.lax.rsqrt(var + EPS)
                * g[None, :, None, None] + be[None, :, None, None])

    y = jnp.maximum(bn(conv(x_nchw, w1, b1), g1, be1), 0.0)
    y = jnp.maximum(bn(conv(y, w2, b2), g2, be2), 0.0)
    return y


if __name__ == "__main__":
    key = jax.random.PRNGKey(0)
    k_x, k_p = jax.random.split(key)

    N, in_c, out_c, H, W = 2, 4, 8, 16, 16
    x = jax.random.normal(k_x, (N, in_c, H, W), jnp.float32)
    params = init_params(k_p, in_c, out_c)

    ref = jax.block_until_ready(ref_forward(x, params))

    # f32 MXU operands: exactness check against the plain-JAX reference.
    out_f32 = jax.block_until_ready(double_conv_block(x, params, compute_dtype=jnp.float32))
    assert out_f32.shape == (N, out_c, H, W)
    assert jnp.allclose(out_f32, ref, rtol=1e-4, atol=1e-4), \
        float(jnp.max(jnp.abs(out_f32 - ref)))

    # bf16 MXU operands (default, v5e/v6e/v7x-native); f32 accumulation + f32 BN math.
    out_bf16 = jax.block_until_ready(double_conv_block(x, params))
    assert jnp.allclose(out_bf16, ref, rtol=5e-2, atol=5e-2), \
        float(jnp.max(jnp.abs(out_bf16 - ref)))

    print("KERNEL_OK")
</pallas_src>

<mosaic_0001>
module attributes {stable_mosaic.version = 11 : i64} {
  func.func @_double_conv_kernel(%arg0: memref<32x64xf32, #tpu.memory_space<vmem>>, %arg1: memref<64x384xf32, #tpu.memory_space<vmem>>, %arg2: memref<1x128xf32, #tpu.memory_space<vmem>>, %arg3: memref<1x128xf32, #tpu.memory_space<vmem>>, %arg4: memref<128x384xf32, #tpu.memory_space<vmem>>, %arg5: memref<1x128xf32, #tpu.memory_space<vmem>>, %arg6: memref<1x128xf32, #tpu.memory_space<vmem>>, %arg7: memref<32x128xf32, #tpu.memory_space<vmem>>) attributes {dimension_semantics = [], scalar_prefetch = 0 : i64, scratch_operands = 0 : i64, tpu.core_type = #tpu.core_type<tc>} {
    %0 = tpu.iota {dimensions = array<i32: 0>} : vector<32x1xi32>
    %c16_i32 = arith.constant 16 : i32
    %c0_i32 = arith.constant 0 : i32
    %1 = arith.cmpi eq, %c16_i32, %c0_i32 : i32
    %c1_i32 = arith.constant 1 : i32
    %2 = arith.select %1, %c1_i32, %c16_i32 : i32
    %3 = vector.broadcast %2 : i32 to vector<32x1xi32>
    %4 = arith.remsi %0, %3 : vector<32x1xi32>
    %c0_i32_0 = arith.constant 0 : i32
    %5 = vector.broadcast %c0_i32_0 : i32 to vector<32x1xi32>
    %6 = arith.cmpi ne, %4, %5 : vector<32x1xi32>
    %c0_i32_1 = arith.constant 0 : i32
    %7 = vector.broadcast %c0_i32_1 : i32 to vector<32x1xi32>
    %8 = arith.cmpi slt, %4, %7 : vector<32x1xi32>
    %c0_i32_2 = arith.constant 0 : i32
    %9 = arith.cmpi slt, %2, %c0_i32_2 : i32
    %10 = vector.broadcast %9 : i1 to vector<32x1xi1>
    %11 = vector.broadcast %10 : vector<32x1xi1> to vector<32x1xi1>
    %12 = arith.xori %8, %11 : vector<32x1xi1>
    %13 = arith.andi %12, %6 : vector<32x1xi1>
    %14 = vector.broadcast %2 : i32 to vector<32x1xi32>
    %15 = arith.addi %4, %14 : vector<32x1xi32>
    %16 = arith.select %13, %15, %4 : vector<32x1xi1>, vector<32x1xi32>
    %c0_i32_3 = arith.constant 0 : i32
    %17 = vector.broadcast %c0_i32_3 : i32 to vector<32x1xi32>
    %18 = arith.cmpi ne, %16, %17 : vector<32x1xi32>
    %c15_i32 = arith.constant 15 : i32
    %19 = vector.broadcast %c15_i32 : i32 to vector<32x1xi32>
    %20 = arith.cmpi ne, %16, %19 : vector<32x1xi32>
    %c0 = arith.constant 0 : index
    %c0_4 = arith.constant 0 : index
    %21 = vector.load %arg0[%c0, %c0_4] : memref<32x64xf32, #tpu.memory_space<vmem>>, vector<32x64xf32>
    %c0_5 = arith.constant 0 : index
    %c0_6 = arith.constant 0 : index
    %22 = vector.load %arg1[%c0_5, %c0_6] : memref<64x384xf32, #tpu.memory_space<vmem>>, vector<64x384xf32>
    %cst = arith.constant dense<0.000000e+00> : vector<32x384xf32>
    %23 = tpu.matmul %21, %22, %cst {dimension_numbers = #tpu.dot_dimension_numbers<[1], [0], [0], [1], [0, 0, 1, 1], [], []>} : vector<32x64xf32>, vector<64x384xf32>, vector<32x384xf32> -> vector<32x384xf32>
    %24 = vector.extract_strided_slice %23 {offsets = [0, 0], sizes = [32, 128], strides = [1, 1]} : vector<32x384xf32> to vector<32x128xf32>
    %25 = vector.extract_strided_slice %23 {offsets = [0, 128], sizes = [32, 128], strides = [1, 1]} : vector<32x384xf32> to vector<32x128xf32>
    %26 = vector.extract_strided_slice %23 {offsets = [0, 256], sizes = [32, 128], strides = [1, 1]} : vector<32x384xf32> to vector<32x128xf32>
    %c1_i32_7 = arith.constant 1 : i32
    %27 = tpu.dynamic_rotate %24 by %c1_i32_7 dim 0 : vector<32x128xf32>, i32 -> vector<32x128xf32>
    %cst_8 = arith.constant 0.000000e+00 : f32
    %28 = vector.shape_cast %18 : vector<32x1xi1> to vector<32x1xi1>
    %29 = vector.broadcast %28 : vector<32x1xi1> to vector<32x128xi1>
    %30 = vector.broadcast %cst_8 : f32 to vector<32x128xf32>
    %31 = arith.select %29, %27, %30 : vector<32x128xi1>, vector<32x128xf32>
    %32 = arith.addf %25, %31 : vector<32x128xf32>
    %c31_i32 = arith.constant 31 : i32
    %33 = tpu.dynamic_rotate %26 by %c31_i32 dim 0 : vector<32x128xf32>, i32 -> vector<32x128xf32>
    %cst_9 = arith.constant 0.000000e+00 : f32
    %34 = vector.shape_cast %20 : vector<32x1xi1> to vector<32x1xi1>
    %35 = vector.broadcast %34 : vector<32x1xi1> to vector<32x128xi1>
    %36 = vector.broadcast %cst_9 : f32 to vector<32x128xf32>
    %37 = arith.select %35, %33, %36 : vector<32x128xi1>, vector<32x128xf32>
    %38 = arith.addf %32, %37 : vector<32x128xf32>
    %c0_10 = arith.constant 0 : index
    %c0_11 = arith.constant 0 : index
    %39 = vector.load %arg2[%c0_10, %c0_11] : memref<1x128xf32, #tpu.memory_space<vmem>>, vector<1x128xf32>
    %c0_12 = arith.constant 0 : index
    %c0_13 = arith.constant 0 : index
    %40 = vector.load %arg3[%c0_12, %c0_13] : memref<1x128xf32, #tpu.memory_space<vmem>>, vector<1x128xf32>
    %cst_14 = arith.constant dense<0.000000e+00> : vector<128xf32>
    %41 = vector.multi_reduction <add>, %38, %cst_14 [0] : vector<32x128xf32> to vector<128xf32>
    %42 = vector.shape_cast %41 : vector<128xf32> to vector<1x128xf32>
    %43 = arith.mulf %38, %38 : vector<32x128xf32>
    %cst_15 = arith.constant dense<0.000000e+00> : vector<128xf32>
    %44 = vector.multi_reduction <add>, %43, %cst_15 [0] : vector<32x128xf32> to vector<128xf32>
    %45 = vector.shape_cast %44 : vector<128xf32> to vector<1x128xf32>
    %46 = tpu.concatenate %42, %45 in 0 : vector<1x128xf32>, vector<1x128xf32> -> vector<2x128xf32>
    %c64_i32 = arith.constant 64 : i32
    %47 = tpu.dynamic_rotate %46 by %c64_i32 dim 1 : vector<2x128xf32>, i32 -> vector<2x128xf32>
    %48 = arith.addf %46, %47 : vector<2x128xf32>
    %c32_i32 = arith.constant 32 : i32
    %49 = tpu.dynamic_rotate %48 by %c32_i32 dim 1 : vector<2x128xf32>, i32 -> vector<2x128xf32>
    %50 = arith.addf %48, %49 : vector<2x128xf32>
    %c16_i32_16 = arith.constant 16 : i32
    %51 = tpu.dynamic_rotate %50 by %c16_i32_16 dim 1 : vector<2x128xf32>, i32 -> vector<2x128xf32>
    %52 = arith.addf %50, %51 : vector<2x128xf32>
    %c8_i32 = arith.constant 8 : i32
    %53 = tpu.dynamic_rotate %52 by %c8_i32 dim 1 : vector<2x128xf32>, i32 -> vector<2x128xf32>
    %54 = arith.addf %52, %53 : vector<2x128xf32>
    %55 = vector.extract_strided_slice %54 {offsets = [0, 0], sizes = [1, 128], strides = [1, 1]} : vector<2x128xf32> to vector<1x128xf32>
    %cst_17 = arith.constant 0.001953125 : f32
    %56 = vector.broadcast %cst_17 : f32 to vector<1x128xf32>
    %57 = arith.mulf %55, %56 : vector<1x128xf32>
    %58 = vector.extract_strided_slice %54 {offsets = [1, 0], sizes = [1, 128], strides = [1, 1]} : vector<2x128xf32> to vector<1x128xf32>
    %cst_18 = arith.constant 0.001953125 : f32
    %59 = vector.broadcast %cst_18 : f32 to vector<1x128xf32>
    %60 = arith.mulf %58, %59 : vector<1x128xf32>
    %61 = arith.mulf %57, %57 : vector<1x128xf32>
    %62 = arith.subf %60, %61 : vector<1x128xf32>
    %cst_19 = arith.constant 0.000000e+00 : f32
    %63 = vector.broadcast %cst_19 : f32 to vector<1x128xf32>
    %64 = arith.maximumf %62, %63 : vector<1x128xf32>
    %cst_20 = arith.constant 9.99999974E-6 : f32
    %65 = vector.broadcast %cst_20 : f32 to vector<1x128xf32>
    %66 = arith.addf %64, %65 : vector<1x128xf32>
    %67 = math.rsqrt %66 : vector<1x128xf32>
    %68 = arith.mulf %39, %67 : vector<1x128xf32>
    %69 = arith.mulf %57, %68 : vector<1x128xf32>
    %70 = arith.subf %40, %69 : vector<1x128xf32>
    %71 = vector.broadcast %68 : vector<1x128xf32> to vector<32x128xf32>
    %72 = arith.mulf %38, %71 : vector<32x128xf32>
    %73 = vector.broadcast %70 : vector<1x128xf32> to vector<32x128xf32>
    %74 = arith.addf %72, %73 : vector<32x128xf32>
    %cst_21 = arith.constant 0.000000e+00 : f32
    %75 = vector.broadcast %cst_21 : f32 to vector<32x128xf32>
    %76 = arith.maximumf %74, %75 : vector<32x128xf32>
    %c0_22 = arith.constant 0 : index
    %c0_23 = arith.constant 0 : index
    %77 = vector.load %arg4[%c0_22, %c0_23] : memref<128x384xf32, #tpu.memory_space<vmem>>, vector<128x384xf32>
    %cst_24 = arith.constant dense<0.000000e+00> : vector<32x384xf32>
    %78 = tpu.matmul %76, %77, %cst_24 {dimension_numbers = #tpu.dot_dimension_numbers<[1], [0], [0], [1], [0, 0, 1, 1], [], []>} : vector<32x128xf32>, vector<128x384xf32>, vector<32x384xf32> -> vector<32x384xf32>
    %79 = vector.extract_strided_slice %78 {offsets = [0, 0], sizes = [32, 128], strides = [1, 1]} : vector<32x384xf32> to vector<32x128xf32>
    %80 = vector.extract_strided_slice %78 {offsets = [0, 128], sizes = [32, 128], strides = [1, 1]} : vector<32x384xf32> to vector<32x128xf32>
    %81 = vector.extract_strided_slice %78 {offsets = [0, 256], sizes = [32, 128], strides = [1, 1]} : vector<32x384xf32> to vector<32x128xf32>
    %c1_i32_25 = arith.constant 1 : i32
    %82 = tpu.dynamic_rotate %79 by %c1_i32_25 dim 0 : vector<32x128xf32>, i32 -> vector<32x128xf32>
    %cst_26 = arith.constant 0.000000e+00 : f32
    %83 = vector.shape_cast %18 : vector<32x1xi1> to vector<32x1xi1>
    %84 = vector.broadcast %83 : vector<32x1xi1> to vector<32x128xi1>
    %85 = vector.broadcast %cst_26 : f32 to vector<32x128xf32>
    %86 = arith.select %84, %82, %85 : vector<32x128xi1>, vector<32x128xf32>
    %87 = arith.addf %80, %86 : vector<32x128xf32>
    %c31_i32_27 = arith.constant 31 : i32
    %88 = tpu.dynamic_rotate %81 by %c31_i32_27 dim 0 : vector<32x128xf32>, i32 -> vector<32x128xf32>
    %cst_28 = arith.constant 0.000000e+00 : f32
    %89 = vector.shape_cast %20 : vector<32x1xi1> to vector<32x1xi1>
    %90 = vector.broadcast %89 : vector<32x1xi1> to vector<32x128xi1>
    %91 = vector.broadcast %cst_28 : f32 to vector<32x128xf32>
    %92 = arith.select %90, %88, %91 : vector<32x128xi1>, vector<32x128xf32>
    %93 = arith.addf %87, %92 : vector<32x128xf32>
    %c0_29 = arith.constant 0 : index
    %c0_30 = arith.constant 0 : index
    %94 = vector.load %arg5[%c0_29, %c0_30] : memref<1x128xf32, #tpu.memory_space<vmem>>, vector<1x128xf32>
    %c0_31 = arith.constant 0 : index
    %c0_32 = arith.constant 0 : index
    %95 = vector.load %arg6[%c0_31, %c0_32] : memref<1x128xf32, #tpu.memory_space<vmem>>, vector<1x128xf32>
    %cst_33 = arith.constant dense<0.000000e+00> : vector<128xf32>
    %96 = vector.multi_reduction <add>, %93, %cst_33 [0] : vector<32x128xf32> to vector<128xf32>
    %97 = vector.shape_cast %96 : vector<128xf32> to vector<1x128xf32>
    %98 = arith.mulf %93, %93 : vector<32x128xf32>
    %cst_34 = arith.constant dense<0.000000e+00> : vector<128xf32>
    %99 = vector.multi_reduction <add>, %98, %cst_34 [0] : vector<32x128xf32> to vector<128xf32>
    %100 = vector.shape_cast %99 : vector<128xf32> to vector<1x128xf32>
    %101 = tpu.concatenate %97, %100 in 0 : vector<1x128xf32>, vector<1x128xf32> -> vector<2x128xf32>
    %c64_i32_35 = arith.constant 64 : i32
    %102 = tpu.dynamic_rotate %101 by %c64_i32_35 dim 1 : vector<2x128xf32>, i32 -> vector<2x128xf32>
    %103 = arith.addf %101, %102 : vector<2x128xf32>
    %c32_i32_36 = arith.constant 32 : i32
    %104 = tpu.dynamic_rotate %103 by %c32_i32_36 dim 1 : vector<2x128xf32>, i32 -> vector<2x128xf32>
    %105 = arith.addf %103, %104 : vector<2x128xf32>
    %c16_i32_37 = arith.constant 16 : i32
    %106 = tpu.dynamic_rotate %105 by %c16_i32_37 dim 1 : vector<2x128xf32>, i32 -> vector<2x128xf32>
    %107 = arith.addf %105, %106 : vector<2x128xf32>
    %c8_i32_38 = arith.constant 8 : i32
    %108 = tpu.dynamic_rotate %107 by %c8_i32_38 dim 1 : vector<2x128xf32>, i32 -> vector<2x128xf32>
    %109 = arith.addf %107, %108 : vector<2x128xf32>
    %110 = vector.extract_strided_slice %109 {offsets = [0, 0], sizes = [1, 128], strides = [1, 1]} : vector<2x128xf32> to vector<1x128xf32>
    %cst_39 = arith.constant 0.001953125 : f32
    %111 = vector.broadcast %cst_39 : f32 to vector<1x128xf32>
    %112 = arith.mulf %110, %111 : vector<1x128xf32>
    %113 = vector.extract_strided_slice %109 {offsets = [1, 0], sizes = [1, 128], strides = [1, 1]} : vector<2x128xf32> to vector<1x128xf32>
    %cst_40 = arith.constant 0.001953125 : f32
    %114 = vector.broadcast %cst_40 : f32 to vector<1x128xf32>
    %115 = arith.mulf %113, %114 : vector<1x128xf32>
    %116 = arith.mulf %112, %112 : vector<1x128xf32>
    %117 = arith.subf %115, %116 : vector<1x128xf32>
    %cst_41 = arith.constant 0.000000e+00 : f32
    %118 = vector.broadcast %cst_41 : f32 to vector<1x128xf32>
    %119 = arith.maximumf %117, %118 : vector<1x128xf32>
    %cst_42 = arith.constant 9.99999974E-6 : f32
    %120 = vector.broadcast %cst_42 : f32 to vector<1x128xf32>
    %121 = arith.addf %119, %120 : vector<1x128xf32>
    %122 = math.rsqrt %121 : vector<1x128xf32>
    %123 = arith.mulf %94, %122 : vector<1x128xf32>
    %124 = arith.mulf %112, %123 : vector<1x128xf32>
    %125 = arith.subf %95, %124 : vector<1x128xf32>
    %126 = vector.broadcast %123 : vector<1x128xf32> to vector<32x128xf32>
    %127 = arith.mulf %93, %126 : vector<32x128xf32>
    %128 = vector.broadcast %125 : vector<1x128xf32> to vector<32x128xf32>
    %129 = arith.addf %127, %128 : vector<32x128xf32>
    %cst_43 = arith.constant 0.000000e+00 : f32
    %130 = vector.broadcast %cst_43 : f32 to vector<32x128xf32>
    %131 = arith.maximumf %129, %130 : vector<32x128xf32>
    %c0_44 = arith.constant 0 : index
    %c0_45 = arith.constant 0 : index
    %132 = vector.load %arg7[%c0_44, %c0_45] : memref<32x128xf32, #tpu.memory_space<vmem>>, vector<32x128xf32>
    tpu.vector_store %arg7[%c0_44, %c0_45], %131 {strides = array<i32>} : memref<32x128xf32, #tpu.memory_space<vmem>>, vector<32x128xf32>,
    return
  }
}

</mosaic_0001>

<bundles_post_ra>
// kernel: tile.23
= control target key start
LH: loop header
LB: loop body
LE: loop exit
PB: predicated region body
PF: predicated region fallthrough
CT: control target
= control target key end

     0   :  { %s28_s0 = inlined_call_operand.vmem [shape: f32[8], index: 0, kind: input, shape index: {}]   ;;  %s29_s1 = inlined_call_operand.vmem [shape: f32[16,8], index: 1, kind: output, shape index: {}]  }
   0x1   :  { %v4_v0 = vld [vmem:[%s28_s0] ss:$0 sm:$0xff] }
   0x2   :  { %5 = vst [vmem:[%s29_s1] sm:$0xff] %v4_v0  ;;  %8 = vst [vmem:[%s29_s1 + $0x8] sm:$0xff] %v4_v0 }

// kernel: tile.24
= control target key start
LH: loop header
LB: loop body
LE: loop exit
PB: predicated region body
PF: predicated region fallthrough
CT: control target
= control target key end

     0   :  { %s131_s10 = smov 120   ;;  %s132_s11 = smov 104   ;;  %vm3_vm0 = vcmask 64512   ;;  %vm9_vm1 = vcmask 1048512   ;;  %vm15_vm2 = vcmask 982912   ;;  %vm21_vm3 = vcmask 917312   ;;  %s207_s0 = inlined_call_operand.vmem [shape: f32[16,8], index: 0, kind: input, shape index: {}]   ;;  %s208_s1 = inlined_call_operand.vmem [shape: f32[1,128], index: 1, kind: output, shape index: {}]  }
   0x1   :  { %v101_v0 = vld [vmem:[%s207_s0 + $0xf] sm:$0x1]   ;;  %v103_v1 = vld [vmem:[%s207_s0 + $0xd] sm:$0x1]   ;;  %v102_v2 = vld [vmem:[%s207_s0 + $0xe] sm:$0x1]  }
   0x2   :  { %7 = vrot.lane.b32.xlu0 %v101_v0, %s131_s10  ;;  %19 = vrot.lane.b32.xlu1 %v103_v1, %s132_s11  ;;  %v104_v3 = vld [vmem:[%s207_s0 + $0xc] sm:$0x1]   ;;  %s133_s16 = smov 112   ;;  %s134_s17 = smov 96   ;;  %v105_v4 = vld [vmem:[%s207_s0 + $0xb] sm:$0x1]  }
   0x3   :  { %v106_v5 = vld [vmem:[%s207_s0 + $0xa] sm:$0x1]   ;;  %v2_v6 = vld [vmem:[%s207_s0] sm:$0x1]   ;;  %s135_s24 = smov 88   ;;  %s136_s25 = smov 80  }
   0x4   :  { %4 = vst.msk [vmem:[#allocation0] sm:$0x1] %vm3_vm0, %v2_v6   ;;  %v107_v7 = vld [vmem:[%s207_s0 + $0x9] sm:$0x1]   ;;  %v108_v8 = vld [vmem:[%s207_s0 + $0x8] sm:$0x1]  }
   0x5   :  { %s137_s30 = smov 72   ;;  %s138_s2 = smov 64   ;;  %v109_v9 = vld [vmem:[%s207_s0 + $0x7] sm:$0x1]   ;;  %v110_v10 = vld [vmem:[%s207_s0 + $0x6] sm:$0x1]  }
   0x6   :  { %13 = vrot.lane.b32.xlu0 %v102_v2, %s133_s16  ;;  %25 = vrot.lane.b32.xlu1 %v104_v3, %s134_s17  ;;  %s139_s7 = smov 56   ;;  %s140_s8 = smov 48   ;;  %v111_v11 = vld [vmem:[%s207_s0 + $0x5] sm:$0x1]   ;;  %v112_v12 = vld [vmem:[%s207_s0 + $0x4] sm:$0x1]  }
   0x7   :  { %s141_s13 = smov 40   ;;  %s142_s14 = smov 32   ;;  %v113_v13 = vld [vmem:[%s207_s0 + $0x3] sm:$0x1]   ;;  %v114_v14 = vld [vmem:[%s207_s0 + $0x2] sm:$0x1]  }
   0x8   :  { %s143_s19 = smov 24   ;;  %s144_s20 = smov 16   ;;  %v115_v15 = vld [vmem:[%s207_s0 + $0x1] sm:$0x1]   ;;  %vm27_vm4 = vcmask 851712   ;;  %vm33_vm5 = vcmask 786112  }
   0x9   :  { %s145_s0 = smov 8   ;;  %vm39_vm6 = vcmask 720512   ;;  %vm45_vm7 = vcmask 654912   ;;  %vm51_vm8 = vcmask 589312   ;;  %vm57_vm9 = vcmask 523712  }
   0xa   :  { %31 = vrot.lane.b32.xlu0 %v105_v4, %s135_s24  ;;  %37 = vrot.lane.b32.xlu1 %v106_v5, %s136_s25  ;;  %vm63_vm10 = vcmask 458112   ;;  %vm69_vm11 = vcmask 392512   ;;  %vm75_vm12 = vcmask 326912   ;;  %vm81_vm13 = vcmask 261312  }
   0xb   :  { %vm87_vm14 = vcmask 195712   ;;  %vm93_vm15 = vcmask 130112  }
   0xe   :  { %43 = vrot.lane.b32.xlu0 %v107_v7, %s137_s30  ;;  %49 = vrot.lane.b32.xlu1 %v108_v8, %s138_s2 }
  0x12   :  { %55 = vrot.lane.b32.xlu0 %v109_v9, %s139_s7  ;;  %61 = vrot.lane.b32.xlu1 %v110_v10, %s140_s8 }
  0x16   :  { %67 = vrot.lane.b32.xlu0 %v111_v11, %s141_s13  ;;  %73 = vrot.lane.b32.xlu1 %v112_v12, %s142_s14 }
  0x1a   :  { %79 = vrot.lane.b32.xlu0 %v113_v13, %s143_s19  ;;  %85 = vrot.lane.b32.xlu1 %v114_v14, %s144_s20 }
  0x1e   :  { %91 = vrot.lane.b32.xlu0 %v115_v15, %s145_s0 }
  0x74   :  { %v8_v16 = vpop.permute.xlu0 %7   ;;  %v20_v17 = vpop.permute.xlu1 %19  }
  0x75   :  { %10 = vst.msk [vmem:[#allocation0] sm:$0x1] %vm9_vm1, %v8_v16  }
  0x78   :  { %v14_v18 = vpop.permute.xlu0 %13   ;;  %v26_v19 = vpop.permute.xlu1 %25  }
  0x79   :  { %16 = vst.msk [vmem:[#allocation0] sm:$0x1] %vm15_vm2, %v14_v18  }
  0x7a   :  { %22 = vst.msk [vmem:[#allocation0] sm:$0x1] %vm21_vm3, %v20_v17  }
  0x7b   :  { %28 = vst.msk [vmem:[#allocation0] sm:$0x1] %vm27_vm4, %v26_v19  }
  0x7c   :  { %v32_v20 = vpop.permute.xlu0 %31   ;;  %v38_v21 = vpop.permute.xlu1 %37  }
  0x7d   :  { %34 = vst.msk [vmem:[#allocation0] sm:$0x1] %vm33_vm5, %v32_v20  }
  0x7e   :  { %40 = vst.msk [vmem:[#allocation0] sm:$0x1] %vm39_vm6, %v38_v21  }
  0x80   :  { %v44_v22 = vpop.permute.xlu0 %43   ;;  %v50_v23 = vpop.permute.xlu1 %49  }
  0x81   :  { %46 = vst.msk [vmem:[#allocation0] sm:$0x1] %vm45_vm7, %v44_v22  }
  0x82   :  { %52 = vst.msk [vmem:[#allocation0] sm:$0x1] %vm51_vm8, %v50_v23  }
  0x84   :  { %v56_v24 = vpop.permute.xlu0 %55   ;;  %v62_v25 = vpop.permute.xlu1 %61  }
  0x85   :  { %58 = vst.msk [vmem:[#allocation0] sm:$0x1] %vm57_vm9, %v56_v24  }
  0x86   :  { %64 = vst.msk [vmem:[#allocation0] sm:$0x1] %vm63_vm10, %v62_v25  }
  0x88   :  { %v68_v26 = vpop.permute.xlu0 %67   ;;  %v74_v27 = vpop.permute.xlu1 %73  }
  0x89   :  { %70 = vst.msk [vmem:[#allocation0] sm:$0x1] %vm69_vm11, %v68_v26  }
  0x8a   :  { %76 = vst.msk [vmem:[#allocation0] sm:$0x1] %vm75_vm12, %v74_v27  }
  0x8c   :  { %v80_v28 = vpop.permute.xlu0 %79   ;;  %v86_v29 = vpop.permute.xlu1 %85  }
  0x8d   :  { %82 = vst.msk [vmem:[#allocation0] sm:$0x1] %vm81_vm13, %v80_v28  }
  0x8e   :  { %88 = vst.msk [vmem:[#allocation0] sm:$0x1] %vm87_vm14, %v86_v29  }
  0x90   :  { %v92_v30 = vpop.permute.xlu0 %91  }
  0x91   :  { %94 = vst.msk [vmem:[#allocation0] sm:$0x1] %vm93_vm15, %v92_v30  }
  0x98   :  { %v98_v31 = vld [vmem:[#allocation0] sm:$0x1] }
  0x99   :  { %100 = vst [vmem:[%s208_s1] sm:$0x1] %v98_v31 }

// kernel: double_conv_block.1
= control target key start
LH: loop header
LB: loop body
LE: loop exit
PB: predicated region body
PF: predicated region fallthrough
CT: control target
= control target key end

     0   :  { %v1001_v3 = vmov 0.0   ;;  %vm115_vm0 = vcmask 523264   ;;  %v26_v41 = vlaneseq  ;;  %vm376_vm7 = vcmask 1040384   ;;  %s1003_s10 = smov 32   ;;  %s1004_s11 = smov 16   ;;  %s1451_s1 = inlined_call_operand.vmem [shape: f32[64,384], index: 1, kind: input, shape index: {}]   ;;  %s1452_s0 = inlined_call_operand.vmem [shape: f32[32,64], index: 0, kind: input, shape index: {}]   ;;  %s1453_s4 = inlined_call_operand.vmem [shape: f32[128,384], index: 4, kind: input, shape index: {}]   ;;  %s1454_s2 = inlined_call_operand.vmem [shape: f32[1,128], index: 2, kind: input, shape index: {}]   ;;  %s1455_s3 = inlined_call_operand.vmem [shape: f32[1,128], index: 3, kind: input, shape index: {}]   ;;  %s1456_s5 = inlined_call_operand.vmem [shape: f32[1,128], index: 5, kind: input, shape index: {}]   ;;  %s1457_s6 = inlined_call_operand.vmem [shape: f32[1,128], index: 6, kind: input, shape index: {}]   ;;  %s1458_s7 = inlined_call_operand.vmem [shape: f32[32,128], index: 7, kind: output, shape index: {}]  }
   0x1   :  { %v92_v0 = vld [vmem:[%s1451_s1 + $0x8] sm:$0xff]  ;;  %v95_v1 = vld [vmem:[%s1451_s1 + $0x20] sm:$0xff]  ;;  %v93_v2 = vld [vmem:[%s1451_s1 + $0x10] sm:$0xff]  ;;  %192 = vmatprep.mubr.f32.mxu0 %v1001_v3  ;;  %s1005_s24 = smov 8  }
   0x2   :  { %v895_v4 = vpack.c.bf16 %v95_v1, %v92_v0  ;;  %v96_v5 = vld [vmem:[%s1451_s1 + $0x28] sm:$0xff]  ;;  %v91_v6 = vld [vmem:[%s1451_s1] sm:$0xff]  ;;  %v94_v7 = vld [vmem:[%s1451_s1 + $0x18] sm:$0xff]  ;;  %v1144_v42 = vshrl.u32 %v26_v41, 7 }
   0x3   :  { %v911_v8 = vpack.c.bf16 %v96_v5, %v93_v2  ;;  %v897_v9 = vpack.c.bf16 %v94_v7, %v91_v6  ;;  %v98_v10 = vld [vmem:[%s1451_s1 + $0x38] sm:$0xff]  ;;  %v101_v11 = vld [vmem:[%s1451_s1 + $0x50] sm:$0xff]  ;;  %v99_v12 = vld [vmem:[%s1451_s1 + $0x40] sm:$0xff] }
   0x4   :  { %896 = vmatprep.subr.bf16.mxu0 %v895_v4  ;;  %v899_v13 = vpack.c.bf16 %v101_v11, %v98_v10  ;;  %v102_v14 = vld [vmem:[%s1451_s1 + $0x58] sm:$0xff]  ;;  %v97_v15 = vld [vmem:[%s1451_s1 + $0x30] sm:$0xff]  ;;  %v100_v16 = vld [vmem:[%s1451_s1 + $0x48] sm:$0xff]  ;;  %v28_v43 = vadd.s32 8, %v1144_v42  ;;  %v29_v45 = vadd.s32 16, %v1144_v42  ;;  %vm331_vm1 = vcmp.lt.s32.totalorder %v1144_v42, 7 }
   0x5   :  { %912 = vmatprep.subr.bf16.mxu1 %v911_v8  ;;  %898 = vmatpush1.bf16.msra.mxu0 %v897_v9  ;;  %v915_v17 = vpack.c.bf16 %v102_v14, %v99_v12  ;;  %v901_v18 = vpack.c.bf16 %v100_v16, %v97_v15  ;;  %v104_v19 = vld [vmem:[%s1451_s1 + $0x68] sm:$0xff]  ;;  %v107_v20 = vld [vmem:[%s1451_s1 + $0x80] sm:$0xff]  ;;  %v105_v21 = vld [vmem:[%s1451_s1 + $0x70] sm:$0xff]  ;;  %vm306_vm2 = vcmp.lt.s32.totalorder %v1144_v42, 1  ;;  %v30_v61 = vadd.s32 24, %v1144_v42 }
   0x6   :  { %914 = vmatpush3.bf16.msra.mxu1 %v911_v8  ;;  %900 = vmatprep.subr.bf16.mxu0 %v899_v13  ;;  %v903_v22 = vpack.c.bf16 %v107_v20, %v104_v19  ;;  %v108_v23 = vld [vmem:[%s1451_s1 + $0x88] sm:$0xff]  ;;  %v103_v24 = vld [vmem:[%s1451_s1 + $0x60] sm:$0xff]  ;;  %v106_v25 = vld [vmem:[%s1451_s1 + $0x78] sm:$0xff]  ;;  %v42_v51 = vand.u32 15, %v28_v43  ;;  %v49_v53 = vand.u32 15, %v29_v45  ;;  %v35_v10 = vand.u32 15, %v1144_v42 }
   0x7   :  { %916 = vmatprep.subr.bf16.mxu1 %v915_v17  ;;  %v919_v26 = vpack.c.bf16 %v108_v23, %v105_v21  ;;  %v110_v27 = vld [vmem:[%s1451_s1 + $0x98] sm:$0xff]  ;;  %v113_v28 = vld [vmem:[%s1451_s1 + $0xb0] sm:$0xff]  ;;  %v111_v29 = vld [vmem:[%s1451_s1 + $0xa0] sm:$0xff]  ;;  %v905_v31 = vpack.c.bf16 %v106_v25, %v103_v24  ;;  %v56_v12 = vand.u32 15, %v30_v61 }
   0x8   :  { %v114_v30 = vld [vmem:[%s1451_s1 + $0xb8] sm:$0xff]  ;;  %v87_v32 = vld [vmem:[%s1452_s0] sm:$0xff]  ;;  %v907_v33 = vpack.c.bf16 %v113_v28, %v110_v27  ;;  %v109_v34 = vld [vmem:[%s1451_s1 + $0x90] sm:$0xff]  ;;  %vm1155_vm3 = vcmp.ne.s32.totalorder %v42_v51, 15  ;;  %vm1159_vm4 = vcmp.ne.s32.totalorder %v49_v53, 0  ;;  %vm1178_vm5 = vcmp.ne.s32.totalorder %v35_v10, 0 }
   0x9   :  { %902 = vmatpush1.bf16.msra.mxu0 %v901_v18  ;;  %v112_v35 = vld [vmem:[%s1451_s1 + $0xa8] sm:$0xff]  ;;  %v923_v36 = vpack.c.bf16 %v114_v30, %v111_v29  ;;  %851 = vmatprep.mubr.msk.f32.mxu1 %vm115_vm0, %v87_v32  ;;  %v89_v39 = vld [vmem:[%s1452_s0 + $0x10] sm:$0xff]  ;;  %v90_v40 = vld [vmem:[%s1452_s0 + $0x18] sm:$0xff]  ;;  %vm1182_vm6 = vcmp.ne.s32.totalorder %v56_v12, 15 }
   0xa   :  { %918 = vmatpush3.bf16.msra.mxu1 %v915_v17  ;;  %904 = vmatprep.subr.bf16.mxu0 %v903_v22  ;;  %v909_v37 = vpack.c.bf16 %v112_v35, %v109_v34  ;;  %v88_v38 = vld [vmem:[%s1452_s0 + $0x8] sm:$0xff]  ;;  %s1002_s0 = smov 64   ;;  %v453_v10 = vld [vmem:[%s1453_s4 + $0x50] sm:$0xff] }
   0xb   :  { %920 = vmatprep.subr.bf16.mxu1 %v919_v26  ;;  %v449_v12 = vld [vmem:[%s1453_s4 + $0x30] sm:$0xff] }
   0xd   :  { %906 = vmatpush1.bf16.msra.mxu0 %v905_v31 }
   0xe   :  { %922 = vmatpush3.bf16.msra.mxu1 %v919_v26  ;;  %908 = vmatprep.subr.bf16.mxu0 %v907_v33 }
   0xf   :  { %924 = vmatprep.subr.bf16.mxu1 %v923_v36 }
  0x11   :  { %910 = vmatpush1.bf16.msra.mxu0 %v909_v37 }
  0x12   :  { %926 = vmatpush3.bf16.msra.mxu1 %v923_v36 }
  0x14   :  { %795 = vmatmul.mubr.msk.f32.vlgmr.msra.gmra.mrb[0].mxu0 %vm115_vm0, %v87_v32 }
  0x15   :  { %852 = vmatmul.mubr.msk.f32.vlgmr.msra.gmra.mrb[0].mxu1 %vm115_vm0, %v88_v38  ;;  %198 = vmatprep.mubr.f32.mxu0 %v1001_v3 }
  0x16   :  { %854 = vmatprep.mubr.msk.f32.mxu1 %vm115_vm0, %v89_v39 }
  0x18   :  { %796 = vmatmul.mubr.msk.f32.gmra.mrb[2].mxu0 %vm115_vm0, %v88_v38 }
  0x19   :  { %855 = vmatmul.mubr.msk.f32.gmra.mrb[2].mxu1 %vm115_vm0, %v90_v40  ;;  %204 = vmatprep.mubr.f32.mxu0 %v1001_v3 }
  0x1c   :  { %797 = vmatmul.mubr.msk.f32.gmra.mrb[4].mxu0 %vm115_vm0, %v89_v39 }
  0x1d   :  { %210 = vmatprep.mubr.f32.mxu0 %v1001_v3 }
  0x20   :  { %798 = vmatmul.mubr.msk.f32.gmra.mrb[6].mxu0 %vm115_vm0, %v90_v40 }
  0x21   :  { %555 = vmatprep.mubr.f32.mxu0 %v1001_v3 }
  0xe7   :  { %v194_v44 = vpop.f32.mrb[0].mxu0 }
  0xe8   :  { %v196_v46 = vpop.f32.mrb[1].mxu0  ;;  %v853_v47 = vpop.f32.mrb[0].mxu1  ;;  %v302_v54 = vrot.slane %v194_v44, 7 }
  0xe9   :  { %v283_v48 = vpop.f32.mrb[1].mxu1  ;;  %v328_v49 = vrot.slane %v853_v47, 1 }
  0xea   :  { %v327_v50 = vrot.slane %v283_v48, 1 }
  0xeb   :  { %v200_v52 = vpop.f32.mrb[2].mxu0 }
  0xec   :  { %v334_v55 = vsel %vm331_vm1, %v327_v50, %v328_v49  ;;  %v303_v56 = vrot.slane %v200_v52, 7  ;;  %v856_v57 = vpop.f32.mrb[2].mxu1  ;;  %v202_v58 = vpop.f32.mrb[3].mxu0 }
  0xed   :  { %v330_v59 = vrot.slane %v856_v57, 1  ;;  %v293_v60 = vpop.f32.mrb[3].mxu1 }
  0xee   :  { %v309_v62 = vsel %vm306_vm2, %v302_v54, %v303_v56  ;;  %v329_v0 = vrot.slane %v293_v60, 1  ;;  %v447_v60 = vld [vmem:[%s1453_s4 + $0x20] sm:$0xff] }
  0xef   :  { %v324_v1 = vadd.f32 %v309_v62, %v202_v58  ;;  %v206_v2 = vpop.f32.mrb[4].mxu0  ;;  %v335_v5 = vsel %vm331_vm1, %v330_v59, %v327_v50 }
  0xf0   :  { %v333_v6 = vsel %vm331_vm1, %v328_v49, %v329_v0  ;;  %v304_v7 = vrot.slane %v206_v2, 7  ;;  %v208_v8 = vpop.f32.mrb[5].mxu0  ;;  %v332_v9 = vsel %vm331_vm1, %v329_v0, %v330_v59  ;;  %v347_v28 = vsel %vm1182_vm6, %v335_v5, 0.0  ;;  %v444_v59 = vld [vmem:[%s1453_s4 + $0x8] sm:$0xff]  ;;  %v443_v0 = vld [vmem:[%s1453_s4] sm:$0xff]  ;;  %v445_v2 = vld [vmem:[%s1453_s4 + $0x10] sm:$0xff] }
  0xf1   :  { %v345_v11 = vsel %vm1155_vm3, %v333_v6, 0.0  ;;  %v927_v62 = vpack.c.bf16 %v447_v60, %v444_v59  ;;  %v478_v59 = vld [vmem:[%s1453_s4 + $0x118] sm:$0xff] }
  0xf2   :  { %v1172_v13 = vadd.f32 %v345_v11, %v324_v1  ;;  %v308_v14 = vsel %vm306_vm2, %v303_v56, %v304_v7  ;;  %v446_v1 = vld [vmem:[%s1453_s4 + $0x18] sm:$0xff] }
  0xf3   :  { %v321_v15 = vsel %vm1159_vm4, %v308_v14, 0.0  ;;  %v212_v16 = vpop.f32.mrb[6].mxu0  ;;  %v929_v6 = vpack.c.bf16 %v446_v1, %v443_v0  ;;  %928 = vmatprep.subr.bf16.mxu0 %v927_v62  ;;  %v452_v14 = vld [vmem:[%s1453_s4 + $0x48] sm:$0xff]  ;;  %v483_v62 = vld [vmem:[%s1453_s4 + $0x140] sm:$0xff] }
  0xf4   :  { %v325_v17 = vadd.f32 %v321_v15, %v208_v8  ;;  %v305_v19 = vrot.slane %v212_v16, 7  ;;  %v214_v20 = vpop.f32.mrb[7].mxu0  ;;  %v364_v31 = vmul.f32 %v1172_v13, %v1172_v13  ;;  %v451_v15 = vld [vmem:[%s1453_s4 + $0x40] sm:$0xff]  ;;  %v933_v16 = vpack.c.bf16 %v452_v14, %v449_v12  ;;  %v485_v12 = vld [vmem:[%s1453_s4 + $0x150] sm:$0xff] }
  0xf5   :  { %930 = vmatpush1.bf16.msra.mxu0 %v929_v6  ;;  %v479_v1 = vld [vmem:[%s1453_s4 + $0x120] sm:$0xff]  ;;  %v481_v6 = vld [vmem:[%s1453_s4 + $0x130] sm:$0xff] }
  0xf6   :  { %v1186_v22 = vadd.f32 %v332_v9, %v325_v17  ;;  %v310_v23 = vsel %vm306_vm2, %v305_v19, %v302_v54  ;;  %v307_v24 = vsel %vm306_vm2, %v304_v7, %v305_v19  ;;  %v448_v7 = vld [vmem:[%s1453_s4 + $0x28] sm:$0xff]  ;;  %v450_v9 = vld [vmem:[%s1453_s4 + $0x38] sm:$0xff] }
  0xf7   :  { %v319_v25 = vsel %vm1178_vm5, %v310_v23, 0.0  ;;  %v326_v26 = vadd.f32 %v307_v24, %v214_v20  ;;  %v959_v8 = vpack.c.bf16 %v448_v7, %v445_v2  ;;  %v931_v11 = vpack.c.bf16 %v453_v10, %v450_v9  ;;  %v454_v17 = vld [vmem:[%s1453_s4 + $0x58] sm:$0xff]  ;;  %v456_v20 = vld [vmem:[%s1453_s4 + $0x68] sm:$0xff]  ;;  %v459_v23 = vld [vmem:[%s1453_s4 + $0x80] sm:$0xff] }
  0xf8   :  { %v323_v27 = vadd.f32 %v319_v25, %v196_v46  ;;  %v365_v34 = vmul.f32 %v1186_v22, %v1186_v22  ;;  %v963_v19 = vpack.c.bf16 %v454_v17, %v451_v15  ;;  %v935_v24 = vpack.c.bf16 %v459_v23, %v456_v20  ;;  %v455_v25 = vld [vmem:[%s1453_s4 + $0x60] sm:$0xff]  ;;  %v482_v2 = vld [vmem:[%s1453_s4 + $0x138] sm:$0xff]  ;;  %v488_v15 = vld [vmem:[%s1453_s4 + $0x168] sm:$0xff] }
  0xf9   :  { %v1196_v29 = vadd.f32 %v347_v28, %v326_v26  ;;  %960 = vmatprep.subr.bf16.mxu1 %v959_v8  ;;  %932 = vmatprep.subr.bf16.mxu0 %v931_v11  ;;  %v458_v26 = vld [vmem:[%s1453_s4 + $0x78] sm:$0xff]  ;;  %v953_v7 = vpack.c.bf16 %v482_v2, %v479_v1  ;;  %v489_v11 = vld [vmem:[%s1453_s4 + $0x170] sm:$0xff] }
  0xfa   :  { %v1198_v30 = vadd.f32 %v334_v55, %v323_v27  ;;  %962 = vmatpush3.bf16.msra.mxu1 %v959_v8  ;;  %934 = vmatpush1.bf16.msra.mxu0 %v933_v16  ;;  %v457_v27 = vld [vmem:[%s1453_s4 + $0x70] sm:$0xff]  ;;  %v937_v28 = vpack.c.bf16 %v458_v26, %v455_v25  ;;  %v484_v8 = vld [vmem:[%s1453_s4 + $0x148] sm:$0xff]  ;;  %v486_v10 = vld [vmem:[%s1453_s4 + $0x158] sm:$0xff] }
  0xfb   :  { %v366_v38 = vmul.f32 %v1196_v29, %v1196_v29  ;;  %964 = vmatprep.subr.bf16.mxu1 %v963_v19  ;;  %936 = vmatprep.subr.bf16.mxu0 %v935_v24  ;;  %v983_v9 = vpack.c.bf16 %v484_v8, %v481_v6  ;;  %v955_v14 = vpack.c.bf16 %v489_v11, %v486_v10  ;;  %v487_v16 = vld [vmem:[%s1453_s4 + $0x160] sm:$0xff]  ;;  %v490_v17 = vld [vmem:[%s1453_s4 + $0x178] sm:$0xff] }
  0xfc   :  { %v363_v32 = vmul.f32 %v1198_v30, %v1198_v30  ;;  %v354_v33 = vadd.f32 %v1172_v13, %v1198_v30  ;;  %v987_v20 = vpack.c.bf16 %v490_v17, %v487_v16 }
  0xfe   :  { %v355_v35 = vadd.f32 %v354_v33, %v1186_v22  ;;  %v367_v36 = vadd.f32 %v364_v31, %v363_v32  ;;  %966 = vmatpush3.bf16.msra.mxu1 %v963_v19  ;;  %v460_v31 = vld [vmem:[%s1453_s4 + $0x88] sm:$0xff]  ;;  %938 = vmatpush1.bf16.msra.mxu0 %v937_v28  ;;  %v462_v33 = vld [vmem:[%s1453_s4 + $0x98] sm:$0xff]  ;;  %v957_v19 = vpack.c.bf16 %v488_v15, %v485_v12 }
  0xff   :  { %v967_v32 = vpack.c.bf16 %v460_v31, %v457_v27 }
 0x100   :  { %v356_v37 = vadd.f32 %v355_v35, %v1196_v29  ;;  %v368_v39 = vadd.f32 %v367_v36, %v365_v34  ;;  %v465_v34 = vld [vmem:[%s1453_s4 + $0xb0] sm:$0xff] }
 0x101   :  { %968 = vmatprep.subr.bf16.mxu1 %v967_v32  ;;  %v939_v35 = vpack.c.bf16 %v465_v34, %v462_v33  ;;  %v461_v36 = vld [vmem:[%s1453_s4 + $0x90] sm:$0xff]  ;;  %v1006_v33 = vmov 1966171168  }
 0x102   :  { %v357_v40 = vrot.slane %v356_v37, 4  ;;  %v369_v41 = vadd.f32 %v368_v39, %v366_v38  ;;  %v463_v38 = vld [vmem:[%s1453_s4 + $0xa0] sm:$0xff]  ;;  %970 = vmatpush3.bf16.msra.mxu1 %v967_v32  ;;  %v401_v34 = vunpack.c.l.s4 %v1006_v33 }
 0x103   :  { %940 = vmatprep.subr.bf16.mxu0 %v939_v35 }
 0x104   :  { %v358_v43 = vadd.f32 %v357_v40, %v356_v37  ;;  %v370_v44 = vrot.slane %v369_v41, 4  ;;  %v464_v37 = vld [vmem:[%s1453_s4 + $0xa8] sm:$0xff]  ;;  %v466_v40 = vld [vmem:[%s1453_s4 + $0xb8] sm:$0xff]  ;;  %v402_v35 = vunpack.c.0.s8 %v401_v34 }
 0x105   :  { %v941_v39 = vpack.c.bf16 %v464_v37, %v461_v36 }
 0x106   :  { %v359_v45 = vrot.slane %v358_v43, 2  ;;  %v371_v46 = vadd.f32 %v370_v44, %v369_v41  ;;  %v971_v41 = vpack.c.bf16 %v466_v40, %v463_v38  ;;  %v471_v44 = vld [vmem:[%s1453_s4 + $0xe0] sm:$0xff]  ;;  %v1366_v36 = vsub.s32 %v402_v35, %v1144_v42 }
 0x107   :  { %942 = vmatpush1.bf16.msra.mxu0 %v941_v39  ;;  %v1373_v40 = vsub.s32 0, %v1144_v42 }
 0x108   :  { %v360_v47 = vadd.f32 %v359_v45, %v358_v43  ;;  %v372_v48 = vrot.slane %v371_v46, 2  ;;  %v468_v43 = vld [vmem:[%s1453_s4 + $0xc8] sm:$0xff]  ;;  %972 = vmatprep.subr.bf16.mxu1 %v971_v41 }
 0x109   :  { %v943_v45 = vpack.c.bf16 %v471_v44, %v468_v43  ;;  %974 = vmatpush3.bf16.msra.mxu1 %v971_v41  ;;  %v353_v44 = vld [vmem:[%s1455_s3] sm:$0x1] }
 0x10a   :  { %v361_v49 = vrot.slane %v360_v47, 1  ;;  %v373_v50 = vadd.f32 %v372_v48, %v371_v46  ;;  %v467_v46 = vld [vmem:[%s1453_s4 + $0xc0] sm:$0xff]  ;;  %v469_v48 = vld [vmem:[%s1453_s4 + $0xd0] sm:$0xff] }
 0x10b   :  { %944 = vmatprep.subr.bf16.mxu0 %v943_v45 }
 0x10c   :  { %v374_v51 = vrot.slane %v373_v50, 1  ;;  %v362_v52 = vadd.f32 %v361_v49, %v360_v47  ;;  %v470_v47 = vld [vmem:[%s1453_s4 + $0xd8] sm:$0xff] }
 0x10d   :  { %v945_v49 = vpack.c.bf16 %v470_v47, %v467_v46 }
 0x10e   :  { %v375_v53 = vadd.f32 %v374_v51, %v373_v50  ;;  %v472_v50 = vld [vmem:[%s1453_s4 + $0xe8] sm:$0xff] }
 0x10f   :  { %v975_v51 = vpack.c.bf16 %v472_v50, %v469_v48  ;;  %946 = vmatpush1.bf16.msra.mxu0 %v945_v49 }
 0x110   :  { %v377_v54 = vsel %vm376_vm7, %v362_v52, %v375_v53  ;;  %v474_v52 = vld [vmem:[%s1453_s4 + $0xf8] sm:$0xff]  ;;  %v477_v53 = vld [vmem:[%s1453_s4 + $0x110] sm:$0xff] }
 0x111   :  { %378 = vrot.lane.b32.xlu0 %v377_v54, %s1002_s0  ;;  %976 = vmatprep.subr.bf16.mxu1 %v975_v51 }
 0x112   :  { %978 = vmatpush3.bf16.msra.mxu1 %v975_v51 }
 0x183   :  { %v379_v55 = vpop.permute.xlu0 %378 }
 0x184   :  { %v380_v56 = vadd.f32 %v379_v55, %v377_v54  ;;  %v947_v54 = vpack.c.bf16 %v477_v53, %v474_v52  ;;  %v473_v55 = vld [vmem:[%s1453_s4 + $0xf0] sm:$0xff] }
 0x186   :  { %381 = vrot.lane.b32.xlu0 %v380_v56, %s1003_s10  ;;  %948 = vmatprep.subr.bf16.mxu0 %v947_v54 }
 0x1f8   :  { %v382_v57 = vpop.permute.xlu0 %381 }
 0x1f9   :  { %v383_v58 = vadd.f32 %v382_v57, %v380_v56  ;;  %v476_v56 = vld [vmem:[%s1453_s4 + $0x108] sm:$0xff]  ;;  %v475_v57 = vld [vmem:[%s1453_s4 + $0x100] sm:$0xff] }
 0x1fa   :  { %v979_v60 = vpack.c.bf16 %v478_v59, %v475_v57 }
 0x1fb   :  { %384 = vrot.lane.b32.xlu1 %v383_v58, %s1004_s11 }
 0x1fc   :  { %980 = vmatprep.subr.bf16.mxu1 %v979_v60 }
 0x1fd   :  { %982 = vmatpush3.bf16.msra.mxu1 %v979_v60 }
 0x1fe   :  { %984 = vmatprep.subr.bf16.mxu1 %v983_v9 }
 0x201   :  { %986 = vmatpush3.bf16.msra.mxu1 %v983_v9 }
 0x202   :  { %988 = vmatprep.subr.bf16.mxu1 %v987_v20 }
 0x205   :  { %990 = vmatpush3.bf16.msra.mxu1 %v987_v20 }
 0x26d   :  { %v385_v61 = vpop.permute.xlu1 %384 }
 0x26e   :  { %v1231_v5 = vadd.f32 %v385_v61, %v383_v58  ;;  %v949_v58 = vpack.c.bf16 %v476_v56, %v473_v55  ;;  %v480_v61 = vld [vmem:[%s1453_s4 + $0x128] sm:$0xff] }
 0x26f   :  { %v951_v0 = vpack.c.bf16 %v483_v62, %v480_v61 }
 0x270   :  { %387 = vrot.lane.b32.xlu1 %v1231_v5, %s1005_s24  ;;  %950 = vmatpush1.bf16.msra.mxu0 %v949_v58 }
 0x271   :  { %952 = vmatprep.subr.bf16.mxu0 %v951_v0 }
 0x274   :  { %954 = vmatpush1.bf16.msra.mxu0 %v953_v7 }
 0x275   :  { %956 = vmatprep.subr.bf16.mxu0 %v955_v14 }
 0x278   :  { %958 = vmatpush1.bf16.msra.mxu0 %v957_v19 }
 0x2e2   :  { %v388_v23 = vpop.permute.xlu1 %387 }
 0x2e3   :  { %v389_v24 = vadd.f32 %v388_v23, %v1231_v5  ;;  %v352_v5 = vld [vmem:[%s1454_s2] sm:$0x1] }
 0x2e5   :  { %v390_v25 = vmul.f32 0.001953125, %v389_v24 }
 0x2e7   :  { %v391_v26 = vmul.f32 %v390_v25, %v390_v25 }
 0x2e9   :  { %v393_v27 = vrot.slane %v391_v26, 7 }
 0x2eb   :  { %v395_v28 = vsub.f32 %v390_v25, %v393_v27 }
 0x2ed   :  { %v396_v31 = vmax.f32 %v395_v28, 0.0 }
 0x2ef   :  { %v397_v32 = vadd.f32 1e-05, %v396_v31 }
 0x2f1   :  { %997 = vrsqrt.f32 %v397_v32 }
 0x2fb   :  { %v998_v37 = vpop.eup %997 }
 0x2fc   :  { %v406_v38 = vrot.slane %v998_v37, %v1366_v36 }
 0x2fe   :  { %v407_v39 = vcombine.high %v406_v38, %v406_v38 }
 0x300   :  { %v414_v41 = vrot.slane %v407_v39, %v1366_v36 }
 0x302   :  { %v416_v43 = vmul.f32 %v414_v41, %v352_v5 }
 0x304   :  { %v417_v45 = vmul.f32 %v416_v43, %v390_v25  ;;  %v423_v46 = vrot.slane %v416_v43, %v1373_v40 }
 0x306   :  { %v418_v47 = vsub.f32 %v353_v44, %v417_v45  ;;  %v425_v49 = vmul.f32 %v423_v46, %v1198_v30  ;;  %v426_v50 = vmul.f32 %v423_v46, %v1172_v13  ;;  %v427_v51 = vmul.f32 %v423_v46, %v1186_v22 }
 0x307   :  { %v428_v55 = vmul.f32 %v423_v46, %v1196_v29 }
 0x308   :  { %v433_v48 = vrot.slane %v418_v47, %v1373_v40 }
 0x30a   :  { %v435_v52 = vadd.f32 %v433_v48, %v425_v49  ;;  %v436_v53 = vadd.f32 %v433_v48, %v426_v50  ;;  %v437_v54 = vadd.f32 %v433_v48, %v427_v51  ;;  %v438_v58 = vadd.f32 %v433_v48, %v428_v55 }
 0x30c   :  { %v439_v56 = vmax.f32 %v435_v52, 0.0  ;;  %v440_v57 = vmax.f32 %v436_v53, 0.0  ;;  %v441_v59 = vmax.f32 %v437_v54, 0.0  ;;  %v442_v30 = vmax.f32 %v438_v58, 0.0 }
 0x30e   :  { %556 = vmatmul.mubr.f32.vlgmr.msra.gmra.mrb[8].mxu0 %v439_v56  ;;  %889 = vmatprep.mubr.f32.mxu1 %v439_v56 }
 0x30f   :  { %890 = vmatmul.mubr.f32.vlgmr.msra.gmra.mrb[4].mxu1 %v440_v57  ;;  %561 = vmatprep.mubr.f32.mxu0 %v1001_v3 }
 0x310   :  { %892 = vmatprep.mubr.f32.mxu1 %v441_v59 }
 0x312   :  { %562 = vmatmul.mubr.f32.gmra.mrb[10].mxu0 %v440_v57 }
 0x313   :  { %893 = vmatmul.mubr.f32.gmra.mrb[6].mxu1 %v442_v30  ;;  %567 = vmatprep.mubr.f32.mxu0 %v1001_v3 }
 0x316   :  { %568 = vmatmul.mubr.f32.gmra.mrb[12].mxu0 %v441_v59 }
 0x317   :  { %573 = vmatprep.mubr.f32.mxu0 %v1001_v3 }
 0x31a   :  { %574 = vmatmul.mubr.f32.gmra.mrb[14].mxu0 %v442_v30 }
 0x3e1   :  { %v557_v13 = vpop.f32.mrb[8].mxu0 }
 0x3e2   :  { %v559_v22 = vpop.f32.mrb[9].mxu0  ;;  %v891_v29 = vpop.f32.mrb[4].mxu1  ;;  %v665_v1 = vrot.slane %v557_v13, 7 }
 0x3e3   :  { %v682_v60 = vrot.slane %v891_v29, 1  ;;  %v646_v61 = vpop.f32.mrb[5].mxu1 }
 0x3e4   :  { %v681_v62 = vrot.slane %v646_v61, 1 }
 0x3e5   :  { %v563_v0 = vpop.f32.mrb[10].mxu0 }
 0x3e6   :  { %v687_v2 = vsel %vm331_vm1, %v681_v62, %v682_v60  ;;  %v666_v6 = vrot.slane %v563_v0, 7  ;;  %v565_v7 = vpop.f32.mrb[11].mxu0  ;;  %v894_v8 = vpop.f32.mrb[6].mxu1 }
 0x3e7   :  { %v684_v9 = vrot.slane %v894_v8, 1  ;;  %v656_v10 = vpop.f32.mrb[7].mxu1 }
 0x3e8   :  { %v671_v3 = vsel %vm306_vm2, %v665_v1, %v666_v6  ;;  %v683_v11 = vrot.slane %v656_v10, 1 }
 0x3e9   :  { %v678_v12 = vadd.f32 %v671_v3, %v565_v7  ;;  %v569_v14 = vpop.f32.mrb[12].mxu0  ;;  %v688_v15 = vsel %vm331_vm1, %v684_v9, %v681_v62 }
 0x3ea   :  { %v686_v16 = vsel %vm331_vm1, %v682_v60, %v683_v11  ;;  %v667_v17 = vrot.slane %v569_v14, 7  ;;  %v571_v19 = vpop.f32.mrb[13].mxu0  ;;  %v685_v20 = vsel %vm331_vm1, %v683_v11, %v684_v9  ;;  %v692_v4 = vsel %vm1182_vm6, %v688_v15, 0.0  ;;  %v697_v15 = vld [vmem:[%s1456_s5] sm:$0x1] }
 0x3eb   :  { %v690_v23 = vsel %vm1155_vm3, %v686_v16, 0.0 }
 0x3ec   :  { %v1400_v24 = vadd.f32 %v690_v23, %v678_v12  ;;  %v670_v25 = vsel %vm306_vm2, %v666_v6, %v667_v17 }
 0x3ed   :  { %v675_v26 = vsel %vm1159_vm4, %v670_v25, 0.0  ;;  %v575_v27 = vpop.f32.mrb[14].mxu0 }
 0x3ee   :  { %v679_v28 = vadd.f32 %v675_v26, %v571_v19  ;;  %v668_v31 = vrot.slane %v575_v27, 7  ;;  %v577_v32 = vpop.f32.mrb[15].mxu0  ;;  %v709_v41 = vmul.f32 %v1400_v24, %v1400_v24  ;;  %v698_v19 = vld [vmem:[%s1457_s6] sm:$0x1] }
 0x3f0   :  { %v1406_v33 = vadd.f32 %v685_v20, %v679_v28  ;;  %v672_v34 = vsel %vm306_vm2, %v668_v31, %v665_v1  ;;  %v669_v63 = vsel %vm306_vm2, %v667_v17, %v668_v31 }
 0x3f1   :  { %v673_v35 = vsel %vm1178_vm5, %v672_v34, 0.0  ;;  %v680_v37 = vadd.f32 %v669_v63, %v577_v32 }
 0x3f2   :  { %v677_v38 = vadd.f32 %v673_v35, %v559_v22  ;;  %v710_v42 = vmul.f32 %v1406_v33, %v1406_v33 }
 0x3f3   :  { %v696_v39 = vadd.f32 %v692_v4, %v680_v37 }
 0x3f4   :  { %v693_v5 = vadd.f32 %v687_v2, %v677_v38 }
 0x3f5   :  { %v711_v47 = vmul.f32 %v696_v39, %v696_v39 }
 0x3f6   :  { %v708_v43 = vmul.f32 %v693_v5, %v693_v5  ;;  %v699_v44 = vadd.f32 %v1400_v24, %v693_v5 }
 0x3f8   :  { %v700_v45 = vadd.f32 %v699_v44, %v1406_v33  ;;  %v712_v18 = vadd.f32 %v709_v41, %v708_v43 }
 0x3fa   :  { %v701_v46 = vadd.f32 %v700_v45, %v696_v39  ;;  %v713_v48 = vadd.f32 %v712_v18, %v710_v42 }
 0x3fc   :  { %v702_v49 = vrot.slane %v701_v46, 4  ;;  %v714_v21 = vadd.f32 %v713_v48, %v711_v47 }
 0x3fe   :  { %v703_v50 = vadd.f32 %v702_v49, %v701_v46  ;;  %v715_v51 = vrot.slane %v714_v21, 4 }
 0x400   :  { %v704_v52 = vrot.slane %v703_v50, 2  ;;  %v716_v53 = vadd.f32 %v715_v51, %v714_v21 }
 0x402   :  { %v705_v54 = vadd.f32 %v704_v52, %v703_v50  ;;  %v717_v55 = vrot.slane %v716_v53, 2 }
 0x404   :  { %v706_v56 = vrot.slane %v705_v54, 1  ;;  %v718_v57 = vadd.f32 %v717_v55, %v716_v53 }
 0x406   :  { %v719_v58 = vrot.slane %v718_v57, 1  ;;  %v707_v59 = vadd.f32 %v706_v56, %v705_v54 }
 0x408   :  { %v720_v30 = vadd.f32 %v719_v58, %v718_v57 }
 0x40a   :  { %v721_v13 = vsel %vm376_vm7, %v707_v59, %v720_v30 }
 0x40b   :  { %722 = vrot.lane.b32.xlu0 %v721_v13, %s1002_s0 }
 0x47d   :  { %v723_v22 = vpop.permute.xlu0 %722 }
 0x47e   :  { %v724_v29 = vadd.f32 %v723_v22, %v721_v13 }
 0x480   :  { %725 = vrot.lane.b32.xlu1 %v724_v29, %s1003_s10 }
 0x4f2   :  { %v726_v60 = vpop.permute.xlu1 %725 }
 0x4f3   :  { %v727_v61 = vadd.f32 %v726_v60, %v724_v29 }
 0x4f5   :  { %728 = vrot.lane.b32.xlu0 %v727_v61, %s1004_s11 }
 0x567   :  { %v729_v62 = vpop.permute.xlu0 %728 }
 0x568   :  { %v730_v0 = vadd.f32 %v729_v62, %v727_v61 }
 0x56a   :  { %731 = vrot.lane.b32.xlu1 %v730_v0, %s1005_s24 }
 0x5dc   :  { %v732_v1 = vpop.permute.xlu1 %731 }
 0x5dd   :  { %v733_v2 = vadd.f32 %v732_v1, %v730_v0 }
 0x5df   :  { %v734_v6 = vmul.f32 0.001953125, %v733_v2 }
 0x5e1   :  { %v735_v7 = vmul.f32 %v734_v6, %v734_v6 }
 0x5e3   :  { %v737_v8 = vrot.slane %v735_v7, 7 }
 0x5e5   :  { %v739_v9 = vsub.f32 %v734_v6, %v737_v8 }
 0x5e7   :  { %v740_v10 = vmax.f32 %v739_v9, 0.0 }
 0x5e9   :  { %v741_v3 = vadd.f32 1e-05, %v740_v10 }
 0x5eb   :  { %999 = vrsqrt.f32 %v741_v3 }
 0x5f5   :  { %v1000_v11 = vpop.eup %999 }
 0x5f6   :  { %v750_v12 = vrot.slane %v1000_v11, %v1366_v36 }
 0x5f8   :  { %v751_v14 = vcombine.high %v750_v12, %v750_v12 }
 0x5fa   :  { %v758_v16 = vrot.slane %v751_v14, %v1366_v36 }
 0x5fc   :  { %v760_v17 = vmul.f32 %v758_v16, %v697_v15 }
 0x5fe   :  { %v761_v20 = vmul.f32 %v760_v17, %v734_v6  ;;  %v767_v23 = vrot.slane %v760_v17, %v1373_v40 }
 0x600   :  { %v762_v25 = vsub.f32 %v698_v19, %v761_v20  ;;  %v769_v26 = vmul.f32 %v767_v23, %v693_v5  ;;  %v770_v27 = vmul.f32 %v767_v23, %v1400_v24  ;;  %v771_v28 = vmul.f32 %v767_v23, %v1406_v33 }
 0x601   :  { %v772_v31 = vmul.f32 %v767_v23, %v696_v39 }
 0x602   :  { %v777_v32 = vrot.slane %v762_v25, %v1373_v40 }
 0x604   :  { %v779_v34 = vadd.f32 %v777_v32, %v769_v26  ;;  %v780_v63 = vadd.f32 %v777_v32, %v770_v27  ;;  %v781_v36 = vadd.f32 %v777_v32, %v771_v28  ;;  %v782_v35 = vadd.f32 %v777_v32, %v772_v31 }
 0x606   :  { %v783_v37 = vmax.f32 %v779_v34, 0.0  ;;  %v784_v38 = vmax.f32 %v780_v63, 0.0  ;;  %v785_v4 = vmax.f32 %v781_v36, 0.0  ;;  %v786_v41 = vmax.f32 %v782_v35, 0.0 }
 0x608   :  { %787 = vst [vmem:[%s1458_s7] sm:$0xff] %v783_v37  ;;  %788 = vst [vmem:[%s1458_s7 + $0x8] sm:$0xff] %v784_v38 }
 0x609   :  { %789 = vst [vmem:[%s1458_s7 + $0x10] sm:$0xff] %v785_v4  ;;  %790 = vst [vmem:[%s1458_s7 + $0x18] sm:$0xff] %v786_v41 }

</bundles_post_ra>
